<compile_context>
chip_gen: v5e
topology: v5e:2x2
jax: 0.10.0
libtpu: 0.0.40
codegen_flags: <defaults>
</compile_context>

<pallas_src>
import functools

import jax
import jax.numpy as jnp
from jax import lax
from jax.experimental import pallas as pl
from jax.experimental.pallas import tpu as pltpu

ALPHA_DEFAULT = 0.05   # noise scale from the reference forward()
EPS = 1e-12            # F.normalize default eps


def _mf_kernel(seed_ref, wl_idx_ref, prompt_ref, pn_ref, weff_ref, out_ref,
               *, add_noise, alpha):
    """One batch tile, feature-major (batch on TPU lanes).

    wl_idx_ref : (2, TB) int32      row 0 = model_win, row 1 = model_loss
    prompt_ref : (text_dim, TB)     compute dtype (bf16 fast path)
    pn_ref     : (dim, num_models)  f32, columns already L2-normalized
    weff_ref   : (dim, text_dim)    compute dtype, classifier folded in
    out_ref    : (1, TB)            f32, lane-dense output row
    """
    num_models = pn_ref.shape[1]
    tb = wl_idx_ref.shape[1]

    # --- in-kernel embedding gather: (win - loss) via a single +/-1 one-hot matmul.
    # precision=HIGHEST keeps the gather exact (no bf16 rounding of P rows).
    wl_idx = wl_idx_ref[...]                                        # (2, TB) int32
    iota = lax.broadcasted_iota(jnp.int32, (num_models, tb), 0)     # (num_models, TB)
    sel = ((iota == wl_idx[0:1, :]).astype(jnp.float32)
           - (iota == wl_idx[1:2, :]).astype(jnp.float32))          # values in {-1, 0, +1}
    wl = jnp.dot(pn_ref[...], sel,
                 precision=lax.Precision.HIGHEST,
                 preferred_element_type=jnp.float32)                # (dim, TB) == win_n - loss_n

    # --- prompt embedding; train-path noise on the on-chip PRNG (TPU only) ---
    pe = prompt_ref[...]                                            # (text_dim, TB), compute dtype
    if add_noise:
        # Distinct, decorrelated stream per tile: seed the HW PRNG with both the
        # user seed and the tile id.
        pltpu.prng_seed(seed_ref[0], pl.program_id(0))
        # TODO(synk): if xprof shows the EUP binding at text_dim~1536 / tile_b>=1024,
        # generate the gaussian in bf16 (v6e/v7x) or from prng_random_bits.
        noise = pltpu.stateful_normal(pe.shape, jnp.float32)
        pe = (pe.astype(jnp.float32) + noise * alpha).astype(weff_ref.dtype)

    # --- projection matmul with the 1-column classifier folded into the weight ---
    proj = jnp.dot(weff_ref[...], pe,
                   preferred_element_type=jnp.float32)              # (dim, TB), f32 accumulation

    # --- interaction + (folded) classifier: sublane reduce -> lane-dense row ---
    out_ref[...] = jnp.sum(wl * proj, axis=0, keepdims=True)


def mf_forward(P, Q, w_proj, w_clf, model_win, model_loss, prompt_idx,
               *, seed=0, test=False, alpha=ALPHA_DEFAULT, tile_b=512,
               compute_dtype=jnp.bfloat16):
    """P: (num_models, dim) f32 embedding table; Q: (num_prompts, text_dim) f32 frozen
    prompt table; w_proj: (dim, text_dim) = text_proj.weight; w_clf: (1, dim) =
    classifier.weight; model_win/model_loss/prompt_idx: (B,) int."""
    num_models, dim = P.shape
    num_prompts, text_dim = Q.shape
    assert w_proj.shape == (dim, text_dim)
    assert w_clf.shape[0] == 1, "classifier is folded into the projection (num_classes == 1)"
    assert tile_b % 128 == 0, "batch tile must be a whole number of lanes"

    B = model_win.shape[0]
    # NOTE(v7x): pick tile_b so n_tiles >= 2 (ideally even) on large batches, so the
    # "parallel" grid axis actually feeds both TensorCores.
    n_tiles = int(pl.cdiv(B, tile_b))
    b_pad = n_tiles * tile_b
    pad = b_pad - B

    on_tpu = jax.default_backend() == "tpu"
    in_kernel_noise = (not test) and on_tpu          # HW PRNG only lowers on real TPU

    # --- glue (all tiny 1-D ops): pad indices BEFORE any big gather ---
    win = jnp.pad(jnp.asarray(model_win, jnp.int32), (0, pad))
    loss = jnp.pad(jnp.asarray(model_loss, jnp.int32), (0, pad))
    pidx = jnp.pad(jnp.asarray(prompt_idx, jnp.int32), (0, pad))
    wl_idx = jnp.stack([win, loss], axis=0)                          # (2, b_pad) int32

    # Major-axis gather of the frozen prompt table, noise (fallback path) fused in,
    # then a single fused transpose + cast to the compute dtype -> (text_dim, b_pad).
    # TODO(synk): move this gather in-kernel (scalar-prefetch pidx, Q in pl.ANY,
    # double-buffered per-row async copies) to drop the (text_dim, B) HBM intermediate.
    prompt = Q[pidx]                                                 # (b_pad, text_dim) f32
    if (not test) and (not in_kernel_noise):
        noise_key = jax.random.PRNGKey(seed)
        prompt = prompt + alpha * jax.random.normal(noise_key, prompt.shape, prompt.dtype)
    prompt_t = prompt.T.astype(compute_dtype)                        # (text_dim, b_pad)

    # Hoisted invariants: L2-normalize P once; fold Linear(dim, 1) into the projection.
    p_norm = jnp.maximum(jnp.sqrt(jnp.sum(P * P, axis=1, keepdims=True)), EPS)
    p_n_t = (P / p_norm).T.astype(jnp.float32)                       # (dim, num_models), resident
    w_eff = (w_proj * w_clf[0][:, None]).astype(compute_dtype)       # (dim, text_dim), resident

    kernel = functools.partial(_mf_kernel, add_noise=in_kernel_noise, alpha=float(alpha))

    grid_spec = pltpu.PrefetchScalarGridSpec(
        num_scalar_prefetch=1,                                       # PRNG seed in SMEM
        grid=(n_tiles,),
        in_specs=[
            pl.BlockSpec((2, tile_b), lambda i, seed: (0, i)),           # packed win/loss indices
            pl.BlockSpec((text_dim, tile_b), lambda i, seed: (0, i)),    # prompt embeddings
            pl.BlockSpec((dim, num_models), lambda i, seed: (0, 0)),     # normalized P (resident)
            pl.BlockSpec((dim, text_dim), lambda i, seed: (0, 0)),       # folded proj weight (resident)
        ],
        out_specs=pl.BlockSpec((1, tile_b), lambda i, seed: (0, i)),     # lane-dense output row
    )

    out = pl.pallas_call(
        kernel,
        grid_spec=grid_spec,
        out_shape=jax.ShapeDtypeStruct((1, b_pad), jnp.float32),
        compiler_params=pltpu.CompilerParams(
            # Batch tiles are independent -> shard across TensorCores on v7x.
            dimension_semantics=("parallel",),
        ),
    )(jnp.array([seed], jnp.int32), wl_idx, prompt_t, p_n_t, w_eff)

    # `.squeeze()` of the (B, 1) logits -> (B,); batch dim kept even when B == 1.
    return out[0, :B]


def reference_forward(P, Q, w_proj, w_clf, model_win, model_loss, prompt_idx,
                      noise=None, alpha=ALPHA_DEFAULT):
    """Pure-JAX reference of the same math (torch layout weights)."""
    def l2n(x):
        return x / jnp.maximum(jnp.sqrt(jnp.sum(x * x, axis=1, keepdims=True)), EPS)
    win = l2n(P[model_win])
    loss = l2n(P[model_loss])
    pe = Q[prompt_idx]
    if noise is not None:
        pe = pe + noise * alpha
    pe = pe @ w_proj.T
    return jnp.dot((win - loss) * pe, w_clf[0])


if __name__ == "__main__":
    # Small deterministic setup consistent with MFModel_Train.__init__
    dim, text_dim = 32, 64
    num_models, num_prompts, num_classes = 8, 16, 1
    B = 200                      # padded to 256 (tile_b=128) -> 2 pipelined batch tiles

    key = jax.random.PRNGKey(0)
    kP, kQ, kproj, kclf, kwin, kloss, kprompt = jax.random.split(key, 7)

    P = jax.random.normal(kP, (num_models, dim), jnp.float32)
    Q = jax.random.normal(kQ, (num_prompts, text_dim), jnp.float32)   # stands in for np.load(npy_path)
    w_proj = jax.random.normal(kproj, (dim, text_dim), jnp.float32) * 0.02   # text_proj.weight
    w_clf = jax.random.normal(kclf, (num_classes, dim), jnp.float32) * 0.02  # classifier.weight

    model_win = jax.random.randint(kwin, (B,), 0, num_models, jnp.int32)
    model_loss = jax.random.randint(kloss, (B,), 0, num_models, jnp.int32)
    prompt_idx = jax.random.randint(kprompt, (B,), 0, num_prompts, jnp.int32)

    # --- test path, f32 compute, 2 grid tiles: strict check vs. the pure-JAX reference ---
    out_test = jax.block_until_ready(
        mf_forward(P, Q, w_proj, w_clf, model_win, model_loss, prompt_idx,
                   test=True, tile_b=128, compute_dtype=jnp.float32))
    ref = reference_forward(P, Q, w_proj, w_clf, model_win, model_loss, prompt_idx)
    assert out_test.shape == (B,), out_test.shape
    assert jnp.allclose(out_test, ref, atol=2e-3, rtol=1e-2), \
        float(jnp.max(jnp.abs(out_test - ref)))

    # --- test path, default (bf16 stream, tile_b=512): looser tolerance ---
    out_bf16 = jax.block_until_ready(
        mf_forward(P, Q, w_proj, w_clf, model_win, model_loss, prompt_idx, test=True))
    assert out_bf16.shape == (B,)
    assert jnp.allclose(out_bf16, ref, atol=1e-2, rtol=5e-2), \
        float(jnp.max(jnp.abs(out_bf16 - ref)))

    # --- train path (gaussian noise * alpha=0.05; on-chip PRNG on TPU, jax.random fallback) ---
    out_train = jax.block_until_ready(
        mf_forward(P, Q, w_proj, w_clf, model_win, model_loss, prompt_idx,
                   seed=1234, test=False, tile_b=128, compute_dtype=jnp.float32))
    assert out_train.shape == (B,)
    assert bool(jnp.all(jnp.isfinite(out_train)))
    assert bool(jnp.any(out_train != out_test))      # noise was actually applied

    print("KERNEL_OK")
</pallas_src>

<mosaic_0001>
module attributes {stable_mosaic.version = 11 : i64} {
  func.func @_mf_kernel(%arg0: i32, %arg1: memref<1xi32, #tpu.memory_space<smem>>, %arg2: memref<2x128xi32, #tpu.memory_space<vmem>>, %arg3: memref<64x128xf32, #tpu.memory_space<vmem>>, %arg4: memref<32x8xf32, #tpu.memory_space<vmem>>, %arg5: memref<32x64xf32, #tpu.memory_space<vmem>>, %arg6: memref<1x128xf32, #tpu.memory_space<vmem>>) attributes {dimension_semantics = [#tpu.dimension_semantics<parallel>], iteration_bounds = array<i64: 2>, scalar_prefetch = 1 : i64, scratch_operands = 0 : i64, tpu.core_type = #tpu.core_type<tc>, window_params = [{transform_indices = @transform_0, window_bounds = array<i64: 2, 128>}, {transform_indices = @transform_1, window_bounds = array<i64: 64, 128>}, {pipeline_mode = #tpu.pipeline_mode<synchronous>, transform_indices = @transform_2, window_bounds = array<i64: 32, 8>}, {pipeline_mode = #tpu.pipeline_mode<synchronous>, transform_indices = @transform_3, window_bounds = array<i64: 32, 64>}, {transform_indices = @transform_4, window_bounds = array<i64: 1, 128>}]} {
    %c0 = arith.constant 0 : index
    %c0_0 = arith.constant 0 : index
    %0 = vector.load %arg2[%c0, %c0_0] : memref<2x128xi32, #tpu.memory_space<vmem>>, vector<2x128xi32>
    %1 = tpu.iota {dimensions = array<i32: 0>} : vector<8x128xi32>
    %2 = vector.extract_strided_slice %0 {offsets = [0, 0], sizes = [1, 128], strides = [1, 1]} : vector<2x128xi32> to vector<1x128xi32>
    %3 = vector.broadcast %2 : vector<1x128xi32> to vector<8x128xi32>
    %4 = arith.cmpi eq, %1, %3 : vector<8x128xi32>
    %5 = arith.extui %4 : vector<8x128xi1> to vector<8x128xi32>
    %6 = arith.sitofp %5 : vector<8x128xi32> to vector<8x128xf32>
    %7 = vector.extract_strided_slice %0 {offsets = [1, 0], sizes = [1, 128], strides = [1, 1]} : vector<2x128xi32> to vector<1x128xi32>
    %8 = vector.broadcast %7 : vector<1x128xi32> to vector<8x128xi32>
    %9 = arith.cmpi eq, %1, %8 : vector<8x128xi32>
    %10 = arith.extui %9 : vector<8x128xi1> to vector<8x128xi32>
    %11 = arith.sitofp %10 : vector<8x128xi32> to vector<8x128xf32>
    %12 = arith.subf %6, %11 : vector<8x128xf32>
    %c0_1 = arith.constant 0 : index
    %c0_2 = arith.constant 0 : index
    %13 = vector.load %arg4[%c0_1, %c0_2] : memref<32x8xf32, #tpu.memory_space<vmem>>, vector<32x8xf32>
    %cst = arith.constant dense<0.000000e+00> : vector<32x128xf32>
    %14 = tpu.matmul %13, %12, %cst {dimension_numbers = #tpu.dot_dimension_numbers<[1], [0], [0], [1], [0, 0, 1, 1], [], []>, precision = #tpu.contract_precision<fp32>} : vector<32x8xf32>, vector<8x128xf32>, vector<32x128xf32> -> vector<32x128xf32>
    %c0_3 = arith.constant 0 : index
    %c0_4 = arith.constant 0 : index
    %15 = vector.load %arg3[%c0_3, %c0_4] : memref<64x128xf32, #tpu.memory_space<vmem>>, vector<64x128xf32>
    %c0_5 = arith.constant 0 : index
    %c0_6 = arith.constant 0 : index
    %16 = vector.load %arg5[%c0_5, %c0_6] : memref<32x64xf32, #tpu.memory_space<vmem>>, vector<32x64xf32>
    %cst_7 = arith.constant dense<0.000000e+00> : vector<32x128xf32>
    %17 = tpu.matmul %16, %15, %cst_7 {dimension_numbers = #tpu.dot_dimension_numbers<[1], [0], [0], [1], [0, 0, 1, 1], [], []>} : vector<32x64xf32>, vector<64x128xf32>, vector<32x128xf32> -> vector<32x128xf32>
    %18 = arith.mulf %14, %17 : vector<32x128xf32>
    %cst_8 = arith.constant dense<0.000000e+00> : vector<128xf32>
    %19 = vector.multi_reduction <add>, %18, %cst_8 [0] : vector<32x128xf32> to vector<128xf32>
    %20 = vector.shape_cast %19 : vector<128xf32> to vector<1x128xf32>
    %c0_9 = arith.constant 0 : index
    %c0_10 = arith.constant 0 : index
    %21 = vector.load %arg6[%c0_9, %c0_10] : memref<1x128xf32, #tpu.memory_space<vmem>>, vector<1x128xf32>
    tpu.vector_store %arg6[%c0_9, %c0_10], %20 {strides = array<i32>} : memref<1x128xf32, #tpu.memory_space<vmem>>, vector<1x128xf32>,
    return
  }
  func.func @transform_0(%arg0: i32, %arg1: memref<1xi32, #tpu.memory_space<smem>>) -> (i32, i32) {
    %c0_i32 = arith.constant 0 : i32
    %c0_i32_0 = arith.constant 0 : i32
    return %c0_i32, %arg0 : i32, i32
  }
  func.func @transform_1(%arg0: i32, %arg1: memref<1xi32, #tpu.memory_space<smem>>) -> (i32, i32) {
    %c0_i32 = arith.constant 0 : i32
    %c0_i32_0 = arith.constant 0 : i32
    return %c0_i32, %arg0 : i32, i32
  }
  func.func @transform_2(%arg0: i32, %arg1: memref<1xi32, #tpu.memory_space<smem>>) -> (i32, i32) {
    %c0_i32 = arith.constant 0 : i32
    %c0_i32_0 = arith.constant 0 : i32
    %c0_i32_1 = arith.constant 0 : i32
    return %c0_i32, %c0_i32_0 : i32, i32
  }
  func.func @transform_3(%arg0: i32, %arg1: memref<1xi32, #tpu.memory_space<smem>>) -> (i32, i32) {
    %c0_i32 = arith.constant 0 : i32
    %c0_i32_0 = arith.constant 0 : i32
    %c0_i32_1 = arith.constant 0 : i32
    return %c0_i32, %c0_i32_0 : i32, i32
  }
  func.func @transform_4(%arg0: i32, %arg1: memref<1xi32, #tpu.memory_space<smem>>) -> (i32, i32) {
    %c0_i32 = arith.constant 0 : i32
    %c0_i32_0 = arith.constant 0 : i32
    return %c0_i32, %arg0 : i32, i32
  }
}

</mosaic_0001>

<bundles_post_ra>
// kernel: tpu_custom_call.1
= control target key start
LH: loop header
LB: loop body
LE: loop exit
PB: predicated region body
PF: predicated region fallthrough
CT: control target
= control target key end

     0   :  { %11 = vsyncpa [#allocation5], 0  ;;  %s1075_s0 = inlined_call_operand.<no memory space> [shape: s32[1], index: 0, kind: input, shape index: {}]   ;;  %s1076_s1 = inlined_call_operand.vmem [shape: s32[2,256], index: 1, kind: input, shape index: {}]   ;;  %s1077_s2 = inlined_call_operand.hbm [shape: f32[64,256], index: 2, kind: input, shape index: {}]   ;;  %s1078_s3 = inlined_call_operand.vmem [shape: f32[32,8], index: 3, kind: input, shape index: {}]   ;;  %s1079_s4 = inlined_call_operand.vmem [shape: f32[32,64], index: 4, kind: input, shape index: {}]   ;;  %s1080_s5 = inlined_call_operand.hbm [shape: f32[1,256], index: 5, kind: output, shape index: {}]  }
   0x1   :  { %13 = vsyncpa [#allocation5 + $0x1], 0 }
   0x2   :  { %14 = vsyncpa [#allocation6], 0 }
   0x3   :  { %16 = vsyncpa [#allocation6 + $0x1], 0  ;;  %s863_s0 = smov 0   ;;  %s865_s18 = smov 0  }
   0x4   :  { %s867_s19 = smov 0   ;;  %s869_s20 = smov 0  }
   0x5 LB: > { %s884_s21 = sadd.s32 4294967295, %s827_s20   ;;  %s662_s22 = sadd.s32 4294967294, %s827_s20   ;;  %s827_s20 = sphi %s869_s20, %s1089_s20   ;;  %s823_s19 = sphi %s867_s19, %s1088_s19   ;;  %s819_s18 = sphi %s865_s18, %s1087_s18   ;;  %s815_s0 = sphi %s863_s0, %s1086_s0  }
   0x6   : > { %s888_s23 = sadd.s32 1, %s827_s20   ;;  %s55_s24 = sadd.s32 1, %s823_s19 }
   0x7   : > { %s52_s25 = ssub.s32 %s827_s20, %s888_s23  ;;  %p62_p0 = scmp.ne.s32.totalorder %s823_s19, %s819_s18 }
   0x8   : > { %p53_p1 = scmp.eq.s32.totalorder %s52_s25, 0  ;;  %p63_p2 = scmp.eq.s32.totalorder %s827_s20, 0 }
   0x9   : > { %p68_p3 = scmp.ne.s32.totalorder %s819_s18, %s815_s0  ;;  %p69_p4 = scmp.eq.s32.totalorder %s884_s21, 0 }
   0xa   : > { %s900_s26 = scalar_select %p53_p1, %s823_s19, %s55_s24  }
   0xb   : > { %p902_p5 = por %p63_p2, %p62_p0  ;;  %p906_p6 = por %p69_p4, %p68_p3 }
   0xc   : > { %p134_p7 = scmp.eq.s32.totalorder %s884_s21, 1  ;;  %p140_p8 = scmp.eq.s32.totalorder %s662_s22, 1 }
   0xd   : > { %p664_p9 = scmp.ge.s32.totalorder %s827_s20, 2  ;;  %p693_p10 = scmp.lt.s32.totalorder %s827_s20, 2 }
   0xe   : > { %p913_p11 = por %p134_p7, %p62_p0  ;;  %p917_p12 = por %p140_p8, %p68_p3 }
   0xf   : > { %s173_s6 = sand.u32 1, %s823_s19   ;;  %s666_s7 = sshll.u32 %s827_s20, 3 }
  0x10   : > { %s665_s8 = sshll.u32 %s173_s6, 6  ;;  %s181_s11 = scalar_lea.hbm %s1077_s2, %s666_s7 }
  0x11   : > { %s182_s12 = sshll.u32 %s181_s11, 4  ;;  %s177_s13 = scalar_lea.vmem [#allocation4], %s665_s8  ;;  %s183_s12 = int_to_ptr.hbm [resolvable:$true] %s182_s12 }
  0x12   : > { %s184_s14 = sshll.u32 %s177_s13, 4  ;;  %p928_p13 = pnand %p693_p10, %p902_p5  ;;  %s185_s14 = int_to_ptr.vmem [resolvable:$true] %s184_s14 }
  0x13   : > { %p667_p0 = scmp.ge.s32.totalorder %s827_s20, 1  ;;  %s174_s16 = scalar_lea.sflag [#allocation5], %s173_s6 }
  0x14   : > { %s731_s17 = sshra.s32 %s183_s12, 4  ;;  %p735_p2 = pneg %p928_p13  ;;  %s732_s17 = int_to_ptr.hbm [resolvable:$true] %s731_s17 }
  0x15   : > { %s733_s22 = scalar_lea.hbm %s732_s17, 64  ;;  %s738_s7 = scalar_lea.hbm %s1077_s2, 128 }
  0x16   : > { %p734_p1 = scmp.ne.s32.totalorder %s732_s17, %s733_s22  ;;  %p739_p5 = scmp.lt.s32.totalorder %s732_s17, %s1077_s2 }
  0x17   : > { %p740_p7 = scmp.lt.s32.totalorder %s738_s7, %s733_s22 }
  0x18   : > { %p736_p3 = pnand %p735_p2, %p734_p1 }
  0x19   : > { %p741_p8 = por %p740_p7, %p739_p5 }
  0x1a   : > { %p737_p4 = pneg %p736_p3 }
  0x1c   : > { %p742_p10 = pnand %p741_p8, %p737_p4 }
  0x1e   : > { %745 = shalt.err (!%p742_p10)
}
  0x1f   : > { %s829_s6 = smov 256   ;;  %s830_s9 = smov 128  }
  0x20   : > { %s831_s10 = smov 8   ;;  %p192_p1 = scmp.lt.s32.totalorder %s827_s20, 3 }
  0x21   : > { %688 = dma.hbm_to_vmem [thread:$0]  (!%p928_p13), %s183_s12, 1024, %s185_s14, %s174_s16, %s829_s6, %s830_s9, %s831_s10  }
  0x22   : > { %p193_p2 = pnand %p667_p0, %p192_p1 }
  0x23   : > { %s947_s11 = sand.u32 (!%p193_p2), 1, %s819_s18  }
  0x24   : > { %196 = sbr.rel (%p193_p2) target bundleno = 265 (0x109), region = 36  ;;  %s668_s13 = sshll.u32 (!%p193_p2), %s947_s11, 6 }
  0x25   : > { %s199_s17 = scalar_lea.sflag (!%p193_p2), [#allocation5], %s947_s11  ;;  %s951_s22 = scalar_lea.vmem (!%p193_p2), [#allocation4], %s668_s13 }
  0x29   : > { %806 = dma.done.wait (%p906_p6), %s199_s17, 1024  }
  0x2a   : > { %808 = vsyncadd (%p906_p6), %s199_s17, 4294966272  ;;  %p231_p13 = scmp.lt.s32.totalorder %s884_s21, 1  ;;  %v236_v0 = vlaneseq  ;;  %vm251_vm0 = vcmask 64512   ;;  %v247_v3 = vld [vmem:[%s1078_s3] sm:$0xff]  ;;  %v248_v4 = vld [vmem:[%s1078_s3 + $0x8] sm:$0xff]  ;;  %v832_v15 = vmov 0.0   ;;  %s580_s27 = scalar_lea.hbm %s1080_s5, %s884_s21 }
  0x2b   : > { %v253_v7 = vsel %vm251_vm0, %v247_v3, 0  ;;  %v256_v8 = vsel %vm251_vm0, %v248_v4, 0  ;;  %v249_v9 = vld [vmem:[%s1078_s3 + $0x10] sm:$0xff]  ;;  %v250_v14 = vld [vmem:[%s1078_s3 + $0x18] sm:$0xff]  ;;  %v508_v40 = vld [vmem:[%s951_s22 + $0x28] sm:$0xff]  ;;  %vm515_vm3 = vcmask 523264  }
  0x2c   : > { %s232_s12 = scalar_select %p231_p13, %s884_s21, 1  ;;  %v237_v1 = vshrl.u32 %v236_v0, 7  ;;  %v973_v10 = vand.u32 4294901760, %v253_v7  ;;  %v975_v11 = vand.u32 4294901760, %v256_v8  ;;  %v259_v12 = vsel %vm251_vm0, %v249_v9, 0  ;;  %v510_v34 = vld [vmem:[%s951_s22 + $0x38] sm:$0xff] }
  0x2d   : > { %v978_v13 = vand.u32 4294901760, %v259_v12  ;;  %v262_v22 = vsel %vm251_vm0, %v250_v14, 0  ;;  %v509_v38 = vld [vmem:[%s951_s22 + $0x30] sm:$0xff]  ;;  %v507_v43 = vld [vmem:[%s951_s22 + $0x20] sm:$0xff]  ;;  %v506_v45 = vld [vmem:[%s951_s22 + $0x18] sm:$0xff]  ;;  %s230_s28 = scalar_lea.vmem [#allocation7], %s947_s11 }
  0x2e   : > { %s669_s14 = sshll.u32 %s232_s12, 1  ;;  %v984_v18 = vsub.f32 %v253_v7, %v973_v10  ;;  %v987_v19 = vsub.f32 %v256_v8, %v975_v11  ;;  %v998_v29 = vand.u32 4294901760, %v262_v22  ;;  %v505_v46 = vld [vmem:[%s951_s22 + $0x10] sm:$0xff]  ;;  %v504_v48 = vld [vmem:[%s951_s22 + $0x8] sm:$0xff]  ;;  %v503_v49 = vld [vmem:[%s951_s22] sm:$0xff]  ;;  %s582_s8 = sshll.u32 %s230_s28, 4  ;;  %s583_s8 = int_to_ptr.vmem [resolvable:$true] %s582_s8 }
  0x2f   : > { %s234_s24 = scalar_lea.vmem %s1076_s1, %s669_s14  ;;  %v990_v21 = vsub.f32 %v259_v12, %v978_v13  ;;  %v511_v50 = vld [vmem:[%s1079_s4] sm:$0xff]  ;;  %v512_v51 = vld [vmem:[%s1079_s4 + $0x8] sm:$0xff]  ;;  %v513_v52 = vld [vmem:[%s1079_s4 + $0x10] sm:$0xff]  ;;  %s584_s6 = sshll.u32 %s580_s27, 4  ;;  %s585_s6 = int_to_ptr.hbm [resolvable:$true] %s584_s6 }
  0x30   : > { %v235_v2 = vld [vmem:[%s234_s24] sm:$0x3]  ;;  %v283_v23 = vand.u32 4294901760, %v984_v18  ;;  %v291_v24 = vand.u32 4294901760, %v987_v19  ;;  %v306_v36 = vsub.f32 %v262_v22, %v998_v29  ;;  %v514_v53 = vld [vmem:[%s1079_s4 + $0x18] sm:$0xff]  ;;  %s572_s9 = scalar_lea.sflag [#allocation6], %s947_s11 }
  0x31   : > { %v238_v5 = vperm.slane %v235_v2, 0  ;;  %v242_v6 = vperm.slane %v235_v2, 1  ;;  %v299_v28 = vand.u32 4294901760, %v990_v21  ;;  %s775_s10 = sshra.s32 %s585_s6, 4  ;;  %s781_s21 = scalar_lea.hbm %s1080_s5, 2  ;;  %s776_s10 = int_to_ptr.hbm [resolvable:$true] %s775_s10 }
  0x32   : > { %v284_v26 = vsub.f32 %v984_v18, %v283_v23  ;;  %v292_v27 = vsub.f32 %v987_v19, %v291_v24  ;;  %v307_v42 = vand.u32 4294901760, %v306_v36  ;;  %s777_s13 = scalar_lea.hbm %s776_s10, 1  ;;  %p782_p4 = scmp.lt.s32.totalorder %s776_s10, %s1080_s5 }
  0x33   : > { %vm239_vm1 = vcmp.eq.s32.totalorder %v237_v1, %v238_v5  ;;  %vm243_vm2 = vcmp.eq.s32.totalorder %v237_v1, %v242_v6  ;;  %v300_v35 = vsub.f32 %v990_v21, %v299_v28  ;;  %p778_p6 = scmp.ne.s32.totalorder %s776_s10, %s777_s13  ;;  %p783_p5 = scmp.lt.s32.totalorder %s781_s21, %s777_s13 }
  0x34   : > { %v670_v16 = vsel %vm239_vm1, 1.0, %v832_v15  ;;  %v671_v17 = vsel %vm243_vm2, 1.0, %v832_v15  ;;  %v285_v31 = vand.u32 4294901760, %v284_v26  ;;  %v293_v32 = vand.u32 4294901760, %v292_v27 }
  0x35   : > { %v246_v20 = vsub.f32 %v670_v16, %v671_v17  ;;  %v301_v41 = vand.u32 4294901760, %v300_v35  ;;  %v308_v44 = vsub.f32 %v306_v36, %v307_v42  ;;  %p779_p0 = pnand %p778_p6, %p913_p11  ;;  %p784_p7 = por %p783_p5, %p782_p4 }
  0x37   : > { %v279_v25 = vand.u32 4294901760, %v246_v20  ;;  %v309_v47 = vand.u32 4294901760, %v308_v44  ;;  %p780_p3 = pneg %p779_p0 }
  0x39   : > { %280 = vmatpush.msra.mxu0 %v279_v25  ;;  %678 = vmatpush.msra.mxu3 %v279_v25  ;;  %v330_v30 = vsub.f32 %v246_v20, %v279_v25  ;;  %p785_p8 = pnand %p784_p7, %p780_p3 }
  0x3a   : > { %286 = vmatmul.f32.vlgmr.msra.gmra.mxu0 %v285_v31  ;;  %294 = vmatmul.f32.vlgmr.msra.gmra.mxu3 %v293_v32 }
  0x3b   : > { %407 = vmatpush.msrb.mxu3 %v279_v25  ;;  %680 = vmatpush.msra.mxu2 %v330_v30  ;;  %v331_v33 = vand.u32 4294901760, %v330_v30 }
  0x3c   : > { %377 = vmatmul.f32.vlgmr.msra.gmra.mxu2 %v987_v19 }
  0x3d   : > { %v332_v37 = vsub.f32 %v330_v30, %v331_v33  ;;  %536 = vmatpush.msrb.mxu2 %v510_v34 }
  0x3f   : > { %v333_v39 = vand.u32 4294901760, %v332_v37  ;;  %537 = vmatpush.msrb.mxu2 %v509_v38 }
  0x41   : > { %679 = vmatpush.msra.mxu1 %v333_v39  ;;  %334 = vmatpush.msrb.mxu0 %v333_v39 }
  0x42   : > { %340 = vmatmul.f32.vlgmr.msra.gmra.mxu1 %v975_v11  ;;  %538 = vmatpush.msrb.mxu2 %v508_v40 }
  0x43   : > { %485 = vmatpush.msrb.mxu1 %v279_v25  ;;  %369 = vmatpush.msra.mxu0 %v330_v30 }
  0x44   : > { %302 = vmatmul.f32.gmra.mxu3 %v301_v41  ;;  %336 = vmatmul.f32.vlgmr.msrb.gmra.mxu0 %v973_v10 }
  0x45   : > { %382 = vmatmul.f32.gmra.mxu2 %v990_v21  ;;  %451 = vmatpush.msrb.mxu0 %v331_v33 }
  0x46   : > { %539 = vmatpush.msrb.mxu2 %v507_v43 }
  0x48   : > { %540 = vmatpush.msrb.mxu2 %v506_v45 }
  0x4a   : > { %344 = vmatmul.f32.gmra.mxu1 %v978_v13  ;;  %541 = vmatpush.msrb.mxu2 %v505_v46 }
  0x4c   : > { %310 = vmatmul.f32.gmra.mxu3 %v309_v47  ;;  %372 = vmatmul.f32.vlgmr.msra.gmra.mxu0 %v984_v18 }
  0x4d   : > { %387 = vmatmul.f32.gmra.mxu2 %v306_v36 }
  0x4e   : > { %542 = vmatpush.msrb.mxu2 %v504_v48 }
  0x50   : > { %543 = vmatpush.msrb.mxu2 %v503_v49 }
  0x52   : > { %348 = vmatmul.f32.gmra.mxu1 %v998_v29 }
  0x54   : > { %411 = vmatmul.f32.vlgmr.msrb.gmra.mxu3 %v283_v23  ;;  %453 = vmatmul.f32.vlgmr.msrb.gmra.mxu0 %v973_v10 }
  0x55   : > { %672 = vmatmul.msk.f32.vlgmr.msrb.gmra.mxu2 %vm515_vm3, %v511_v50 }
  0x5a   : > { %487 = vmatmul.f32.vlgmr.msrb.gmra.mxu1 %v973_v10 }
  0x5c   : > { %417 = vmatmul.f32.gmra.mxu3 %v291_v24  ;;  %457 = vmatmul.f32.gmra.mxu0 %v975_v11 }
  0x5d   : > { %673 = vmatmul.msk.f32.gmra.mxu2 %vm515_vm3, %v512_v51 }
  0x62   : > { %491 = vmatmul.f32.gmra.mxu1 %v975_v11 }
  0x64   : > { %423 = vmatmul.f32.gmra.mxu3 %v299_v28  ;;  %461 = vmatmul.f32.gmra.mxu0 %v978_v13 }
  0x65   : > { %674 = vmatmul.msk.f32.gmra.mxu2 %vm515_vm3, %v513_v52 }
  0x6a   : > { %495 = vmatmul.f32.gmra.mxu1 %v978_v13 }
  0x6c   : > { %429 = vmatmul.f32.gmra.mxu3 %v307_v42  ;;  %465 = vmatmul.f32.gmra.mxu0 %v998_v29 }
  0x6d   : > { %675 = vmatmul.msk.f32.gmra.mxu2 %vm515_vm3, %v514_v53 }
  0x72   : > { %499 = vmatmul.f32.gmra.mxu1 %v998_v29 }
  0xb7   : > { %v287_v54 = vpop.f32.mrf.mxu0 }
  0xbd   : > { %v295_v55 = vpop.f32.mrf.mxu3 }
  0xbf   : > { %v341_v56 = vpop.f32.mrf.mxu1  ;;  %v378_v57 = vpop.f32.mrf.mxu2 }
  0xc0   : > { %v342_v7 = vadd.f32 %v341_v56, %v295_v55 }
  0xc1   : > { %v337_v58 = vpop.f32.mrf.mxu0 }
  0xc2   : > { %v338_v11 = vadd.f32 %v337_v58, %v287_v54  ;;  %v379_v12 = vadd.f32 %v378_v57, %v342_v7 }
  0xc7   : > { %v303_v59 = vpop.f32.mrf.mxu3  ;;  %v345_v60 = vpop.f32.mrf.mxu1 }
  0xc8   : > { %v383_v61 = vpop.f32.mrf.mxu2  ;;  %v346_v13 = vadd.f32 %v345_v60, %v303_v59 }
  0xc9   : > { %v373_v62 = vpop.f32.mrf.mxu0 }
  0xca   : > { %v374_v14 = vadd.f32 %v373_v62, %v338_v11  ;;  %v384_v17 = vadd.f32 %v383_v61, %v346_v13 }
  0xcf   : > { %v311_v63 = vpop.f32.mrf.mxu3  ;;  %v349_v0 = vpop.f32.mrf.mxu1 }
  0xd0   : > { %v388_v1 = vpop.f32.mrf.mxu2  ;;  %v350_v24 = vadd.f32 %v349_v0, %v311_v63 }
  0xd1   : > { %v454_v2 = vpop.f32.mrf.mxu0 }
  0xd2   : > { %v389_v28 = vadd.f32 %v388_v1, %v350_v24 }
  0xd7   : > { %v412_v3 = vpop.f32.mrf.mxu3  ;;  %v488_v4 = vpop.f32.mrf.mxu1 }
  0xd8   : > { %v545_v5 = vpop.f32.mrf.mxu2  ;;  %v413_v18 = vadd.f32 %v412_v3, %v374_v14 }
  0xd9   : > { %v458_v6 = vpop.f32.mrf.mxu0 }
  0xda   : > { %v455_v25 = vadd.f32 %v454_v2, %v413_v18 }
  0xdc   : > { %v489_v29 = vadd.f32 %v488_v4, %v455_v25 }
  0xde   : > { %v557_v36 = vmul.f32 %v545_v5, %v489_v29 }
  0xdf   : > { %v418_v8 = vpop.f32.mrf.mxu3  ;;  %v492_v9 = vpop.f32.mrf.mxu1 }
  0xe0   : > { %v548_v10 = vpop.f32.mrf.mxu2  ;;  %v419_v15 = vadd.f32 %v418_v8, %v379_v12 }
  0xe1   : > { %v462_v16 = vpop.f32.mrf.mxu0 }
  0xe2   : > { %v459_v21 = vadd.f32 %v458_v6, %v419_v15 }
  0xe4   : > { %v493_v27 = vadd.f32 %v492_v9, %v459_v21 }
  0xe6   : > { %v558_v33 = vmul.f32 %v548_v10, %v493_v27 }
  0xe7   : > { %v424_v19 = vpop.f32.mrf.mxu3  ;;  %v496_v20 = vpop.f32.mrf.mxu1 }
  0xe8   : > { %v425_v22 = vadd.f32 %v424_v19, %v384_v17  ;;  %v551_v23 = vpop.f32.mrf.mxu2  ;;  %v561_v40 = vadd.f32 %v558_v33, %v557_v36 }
  0xe9   : > { %v466_v32 = vpop.f32.mrf.mxu0 }
  0xea   : > { %v463_v26 = vadd.f32 %v462_v16, %v425_v22 }
  0xec   : > { %v497_v30 = vadd.f32 %v496_v20, %v463_v26 }
  0xee   : > { %v559_v37 = vmul.f32 %v551_v23, %v497_v30 }
  0xef   : > { %v430_v31 = vpop.f32.mrf.mxu3  ;;  %v500_v35 = vpop.f32.mrf.mxu1 }
  0xf0   : > { %v431_v34 = vadd.f32 %v430_v31, %v389_v28  ;;  %v554_v39 = vpop.f32.mrf.mxu2  ;;  %v562_v42 = vadd.f32 %v561_v40, %v559_v37 }
  0xf2   : > { %v467_v38 = vadd.f32 %v466_v32, %v431_v34 }
  0xf4   : > { %v501_v41 = vadd.f32 %v500_v35, %v467_v38 }
  0xf6   : > { %v560_v43 = vmul.f32 %v554_v39, %v501_v41 }
  0xf8   : > { %v563_v44 = vadd.f32 %v562_v42, %v560_v43 }
  0xfa   : > { %v564_v45 = vrot.slane %v563_v44, 4 }
  0xfc   : > { %v565_v46 = vadd.f32 %v564_v45, %v563_v44 }
  0xfe   : > { %v566_v47 = vrot.slane %v565_v46, 2 }
 0x100   : > { %v567_v48 = vadd.f32 %v566_v47, %v565_v46 }
 0x102   : > { %v568_v49 = vrot.slane %v567_v48, 1 }
 0x104   : > { %v569_v50 = vadd.f32 %v568_v49, %v567_v48 }
 0x106   : > { %570 = vst [vmem:[%s230_s28] sm:$0x1] %v569_v50 }
 0x107   : > { %788 = shalt.err (!%p785_p8)
}
 0x108   : > { %683 = dma.vmem_to_hbm [thread:$0]  (%p913_p11), %s583_s8, 16, %s585_s6, %s572_s9  }
 0x109 PF: > { %s596_s11 = sand.u32 1, %s815_s0   ;;  %p690_p10 = pnand %p664_p9, %p917_p12 }
 0x10a   : > { %s597_s15 = scalar_lea.sflag [#allocation6], %s596_s11 }
 0x10b   : > { %p691_p1 = pneg %p690_p10 }
 0x10d   : > { %810 = dma.done.wait (%p691_p1), %s597_s15, 16  }
 0x10e   : > { %812 = vsyncadd (%p691_p1), %s597_s15, 4294967280  ;;  %p19_p2 = scmp.ge.s32.totalorder %s888_s23, 4   ;;  %s1086_s0 = smov %s819_s18 }
 0x10f   : > { %s1087_s18 = smov %s823_s19  ;;  %s1088_s19 = smov %s900_s26 }
 0x110   : > { %s1089_s20 = smov %s888_s23  ;;  %21 = sbr.rel (!%p19_p2) target bundleno = 5 (0x5), region = 84 }
 0x115   :  { %602 = vsyncpa [#allocation5], 1 }
 0x116   :  { %604 = vsyncpa [#allocation5 + $0x1], 1 }
 0x117   :  { %605 = vsyncpa [#allocation6], 1 }
 0x118   :  { %607 = vsyncpa [#allocation6 + $0x1], 1 }

</bundles_post_ra>
